<compile_context>
chip_gen: v5e
topology: v5e:2x2
jax: 0.10.0
libtpu: 0.0.40
codegen_flags: <defaults>
</compile_context>

<pallas_src>
import jax
import jax.numpy as jnp
from jax.experimental import pallas as pl
from jax.experimental.pallas import tpu as pltpu

_LANES = 128
_THRESH = 20.0          # matches PyTorch F.softplus threshold
_1D_BLOCK = 128 * 1024  # elements; fallback path for n % 128 != 0


def _mish_kernel(x_ref, o_ref):
    x = x_ref[...].astype(jnp.float32)
    # Mish(x) = x * tanh(softplus(x)).  Single-exp algebraic identity:
    #   e = exp(x);  tanh(softplus(x)) = e*(e+2) / (e*(e+2) + 2)
    # Clamp the exp argument so the unselected `where` branch never produces
    # inf/inf = NaN; for x > 20, tanh(softplus(x)) == 1 in f32 so Mish(x) = x.
    e = jnp.exp(jnp.minimum(x, _THRESH))
    nn = e * (e + 2.0)
    # Exact reciprocal (EUP approx + VALU Newton step) only where the extra
    # precision is visible (f32 output); sub-f32 outputs use the EUP-only
    # approximation so the kernel stays memory-bound for bf16 I/O on v7x.
    use_approx = o_ref.dtype.itemsize < 4
    t = nn * pl.reciprocal(nn + 2.0, approx=use_approx)
    y = jnp.where(x > _THRESH, x, x * t)
    o_ref[...] = y.astype(o_ref.dtype)


def _mish_jnp(x):
    """Pure-jnp Mish reference."""
    xf = x.astype(jnp.float32)
    return (xf * jnp.tanh(jnp.logaddexp(xf, 0.0))).astype(x.dtype)


def _block_bytes_for_device():
    """Per-generation HBM-block size (bytes) for the elementwise pipeline."""
    try:
        kind = jax.devices()[0].device_kind.lower()
    except Exception:
        kind = ""
    if "v5 lite" in kind or "v5e" in kind or "v5lite" in kind:
        return 2 * 1024 * 1024   # v5e: 0.82 TB/s -> overhead already <6% at 2 MiB
    if "7" in kind:
        return 8 * 1024 * 1024   # v7x: 3.2 TB/s -> bigger blocks hide per-step cost
    return 4 * 1024 * 1024       # v6e / default


def _round_up(v, m):
    return ((v + m - 1) // m) * m


def mish(x, *, block_bytes=None):
    """Elementwise Mish via a Pallas TPU kernel. Any shape / float dtype."""
    orig_shape = x.shape
    orig_dtype = x.dtype
    flat = x.reshape(-1)
    n = flat.shape[0]
    if n == 0:
        return x

    if block_bytes is None:
        block_bytes = _block_bytes_for_device()
    itemsize = jnp.zeros((), orig_dtype).dtype.itemsize
    cost = pl.CostEstimate(flops=10 * n, transcendentals=n,
                           bytes_accessed=2 * n * itemsize)

    if n % _LANES == 0:
        # Lane-aligned: zero-copy 2D view, lane-dense (unmasked) stores.
        rows = n // _LANES
        # Dtype-scaled row tile so block *bytes* stay constant across dtypes;
        # multiple of 32 keeps native sublane packing for f32 / bf16 / 8-bit.
        tile_rows = max(32, (block_bytes // (itemsize * _LANES)) // 32 * 32)

        if rows <= tile_rows:
            if rows >= 64:
                # Split into two comparable blocks so v7x's 2 TensorCores
                # (dimension_semantics="parallel") both get work.
                tr = _round_up((rows + 1) // 2, 32)
            else:
                tr = rows            # single block == full extent (always legal)
        else:
            # Even, balanced grid: avoids one TC chewing a full block while the
            # other handles a tiny stub on rows = tile_rows + epsilon inputs.
            n_blocks = pl.cdiv(rows, tile_rows)
            n_blocks += n_blocks & 1
            tr = _round_up(pl.cdiv(rows, n_blocks), 32)   # <= tile_rows
        grid = (pl.cdiv(rows, tr),)

        # Double-buffered in+out (4 x block) + headroom; stays under v7x's
        # 64 MiB physical VMEM even at 8 MiB blocks (40 MiB scoped).
        vmem_limit = 4 * tr * _LANES * itemsize + 8 * 1024 * 1024

        x2d = flat.reshape(rows, _LANES)
        out2d = pl.pallas_call(
            _mish_kernel,
            out_shape=jax.ShapeDtypeStruct((rows, _LANES), orig_dtype),
            grid_spec=pltpu.PrefetchScalarGridSpec(
                num_scalar_prefetch=0,
                grid=grid,
                in_specs=[pl.BlockSpec((tr, _LANES), lambda i: (i, 0))],
                out_specs=pl.BlockSpec((tr, _LANES), lambda i: (i, 0)),
            ),
            compiler_params=pltpu.CompilerParams(
                dimension_semantics=("parallel",),  # shards across v7x's 2 TCs
                vmem_limit_bytes=vmem_limit,
            ),
            cost_estimate=cost,
        )(x2d)
        return out2d.reshape(orig_shape)

    # Not a multiple of 128 lanes: run a single pallas_call over the flat 1-D
    # array and let Pallas mask the partial last block -- one slightly masked
    # store instead of a jnp tail + full-array concatenate (extra HBM pass).
    blk = n if n <= _1D_BLOCK else _1D_BLOCK   # _1D_BLOCK is a multiple of 8*128
    grid = (pl.cdiv(n, blk),)
    out = pl.pallas_call(
        _mish_kernel,
        out_shape=jax.ShapeDtypeStruct((n,), orig_dtype),
        grid_spec=pltpu.PrefetchScalarGridSpec(
            num_scalar_prefetch=0,
            grid=grid,
            in_specs=[pl.BlockSpec((blk,), lambda i: (i,))],
            out_specs=pl.BlockSpec((blk,), lambda i: (i,)),
        ),
        compiler_params=pltpu.CompilerParams(
            dimension_semantics=("parallel",),
            vmem_limit_bytes=32 * 1024 * 1024,
        ),
        cost_estimate=cost,
    )(flat)
    return out.reshape(orig_shape)


if __name__ == "__main__":
    key = jax.random.PRNGKey(0)
    # NCHW input, matching the PyTorch conv-style layout the module sees.
    x = jax.random.normal(key, (2, 4, 16, 16), dtype=jnp.float32) * 3.0

    y = mish(x)
    jax.block_until_ready(y)

    y_ref = _mish_jnp(x)
    assert y.shape == x.shape and y.dtype == x.dtype
    assert jnp.allclose(y, y_ref, atol=1e-5, rtol=1e-5), "mismatch vs reference"

    print("KERNEL_OK")
</pallas_src>

<mosaic_0001>
module attributes {stable_mosaic.version = 11 : i64} {
  func.func @_mish_kernel(%arg0: i32, %arg1: memref<16x128xf32, #tpu.memory_space<vmem>>, %arg2: memref<16x128xf32, #tpu.memory_space<vmem>>) attributes {dimension_semantics = [#tpu.dimension_semantics<parallel>], iteration_bounds = array<i64: 1>, scalar_prefetch = 0 : i64, scratch_operands = 0 : i64, tpu.core_type = #tpu.core_type<tc>, window_params = [{transform_indices = @transform_0, window_bounds = array<i64: 16, 128>}, {transform_indices = @transform_1, window_bounds = array<i64: 16, 128>}]} {
    %c0 = arith.constant 0 : index
    %c0_0 = arith.constant 0 : index
    %0 = vector.load %arg1[%c0, %c0_0] : memref<16x128xf32, #tpu.memory_space<vmem>>, vector<16x128xf32>
    %cst = arith.constant 2.000000e+01 : f32
    %1 = vector.broadcast %cst : f32 to vector<16x128xf32>
    %2 = arith.minimumf %0, %1 : vector<16x128xf32>
    %3 = math.exp %2 : vector<16x128xf32>
    %cst_1 = arith.constant 2.000000e+00 : f32
    %4 = vector.broadcast %cst_1 : f32 to vector<16x128xf32>
    %5 = arith.addf %3, %4 : vector<16x128xf32>
    %6 = arith.mulf %3, %5 : vector<16x128xf32>
    %cst_2 = arith.constant 2.000000e+00 : f32
    %7 = vector.broadcast %cst_2 : f32 to vector<16x128xf32>
    %8 = arith.addf %6, %7 : vector<16x128xf32>
    %9 = tpu.reciprocal %8 : vector<16x128xf32> -> vector<16x128xf32>
    %10 = arith.mulf %6, %9 : vector<16x128xf32>
    %cst_3 = arith.constant 2.000000e+01 : f32
    %11 = vector.broadcast %cst_3 : f32 to vector<16x128xf32>
    %12 = arith.cmpf ogt, %0, %11 : vector<16x128xf32>
    %13 = arith.mulf %0, %10 : vector<16x128xf32>
    %14 = arith.select %12, %0, %13 : vector<16x128xi1>, vector<16x128xf32>
    %c0_4 = arith.constant 0 : index
    %c0_5 = arith.constant 0 : index
    %15 = vector.load %arg2[%c0_4, %c0_5] : memref<16x128xf32, #tpu.memory_space<vmem>>, vector<16x128xf32>
    tpu.vector_store %arg2[%c0_4, %c0_5], %14 {strides = array<i32>} : memref<16x128xf32, #tpu.memory_space<vmem>>, vector<16x128xf32>,
    return
  }
  func.func @transform_0(%arg0: i32) -> (i32, i32) {
    %c0_i32 = arith.constant 0 : i32
    %c0_i32_0 = arith.constant 0 : i32
    return %arg0, %c0_i32 : i32, i32
  }
  func.func @transform_1(%arg0: i32) -> (i32, i32) {
    %c0_i32 = arith.constant 0 : i32
    %c0_i32_0 = arith.constant 0 : i32
    return %arg0, %c0_i32 : i32, i32
  }
}

</mosaic_0001>

<bundles_post_ra>
// kernel: tpu_custom_call.1
= control target key start
LH: loop header
LB: loop body
LE: loop exit
PB: predicated region body
PF: predicated region fallthrough
CT: control target
= control target key end

     0   :  { %6 = vsyncpa [#allocation3], 0  ;;  %s186_s0 = inlined_call_operand.hbm [shape: f32[16,128], index: 0, kind: input, shape index: {}]   ;;  %s187_s1 = inlined_call_operand.hbm [shape: f32[16,128], index: 1, kind: output, shape index: {}]  }
   0x1   :  { %7 = vsyncpa [#allocation4], 0  ;;  %s12_s8 = sshll.u32 %s186_s0, 4  ;;  %s160_s9 = smov [#allocation2]   ;;  %s13_s8 = int_to_ptr.hbm [resolvable:$true] %s12_s8 }
   0x2   :  { %s14_s10 = sshll.u32 %s160_s9, 4  ;;  %s161_s11 = smov 128   ;;  %s15_s10 = int_to_ptr.vmem [resolvable:$true] %s14_s10 }
   0x3   :  { %s162_s12 = smov 8  }
   0x4   :  { %20 = dma.hbm_to_vmem [thread:$0]  %s13_s8, 256, %s15_s10, [#allocation3], %s161_s11, %s161_s11, %s162_s12  }
   0x5   :  { %156 = dma.done.wait [#allocation3], 256  }
   0x6   :  { %157 = vsyncadd [#allocation3], 4294967040  ;;  %v25_v0 = vld [vmem:[#allocation2] sm:$0xff]  ;;  %v26_v1 = vld [vmem:[#allocation2 + $0x8] sm:$0xff]  ;;  %s163_s0 = smov [#allocation5]   ;;  %s83_s16 = sshll.u32 %s187_s1, 4  ;;  %s84_s16 = int_to_ptr.hbm [resolvable:$true] %s83_s16 }
   0x7   :  { %v27_v2 = vmin.f32 %v25_v0, 20.0  ;;  %v28_v3 = vmin.f32 %v26_v1, 20.0  ;;  %vm69_vm8 = vcmp.gt.f32.partialorder %v25_v0, 20.0  ;;  %s81_s13 = sshll.u32 %s163_s0, 4  ;;  %vm70_vm9 = vcmp.gt.f32.partialorder %v26_v1, 20.0  ;;  %s82_s13 = int_to_ptr.vmem [resolvable:$true] %s81_s13 }
   0x9   :  { %v29_v4 = vmul.f32 1.442695, %v27_v2  ;;  %v31_v5 = vmul.f32 1.442695, %v28_v3 }
   0xb   :  { %100 = vpow2.f32 %v29_v4 }
   0xc   :  { %102 = vpow2.f32 %v31_v5 }
  0x11   :  { %v101_v6 = vpop.eup %100 }
  0x12   :  { %v103_v7 = vpop.eup %102  ;;  %v33_v8 = vadd.f32 2.0, %v101_v6 }
  0x13   :  { %v34_v9 = vadd.f32 2.0, %v103_v7 }
  0x14   :  { %v35_v10 = vmul.f32 %v101_v6, %v33_v8 }
  0x15   :  { %v36_v11 = vmul.f32 %v103_v7, %v34_v9 }
  0x16   :  { %v37_v12 = vadd.f32 2.0, %v35_v10 }
  0x17   :  { %v38_v13 = vadd.f32 2.0, %v36_v11 }
  0x18   :  { %104 = vrcp.f32 %v37_v12  ;;  %vm44_vm0 = vweird.f32 %v37_v12  ;;  %v50_v17 = vand.u32 2147483648, %v37_v12  ;;  %v48_v20 = vand.u32 2147483647, %v37_v12 }
  0x19   :  { %106 = vrcp.f32 %v38_v13  ;;  %v64_v21 = vand.u32 2147483648, %v38_v13  ;;  %vm58_vm2 = vweird.f32 %v38_v13  ;;  %v62_v23 = vand.u32 2147483647, %v38_v13 }
  0x1a   :  { %v51_v25 = vor.u32 1.1754944e-38, %v50_v17  ;;  %vm49_vm5 = vcmp.eq.f32.partialorder %v48_v20, 8.507059e+37 }
  0x1b   :  { %v65_v28 = vor.u32 1.1754944e-38, %v64_v21  ;;  %vm63_vm7 = vcmp.eq.f32.partialorder %v62_v23, 8.507059e+37 }
  0x1e   :  { %v105_v14 = vpop.eup %104 }
  0x1f   :  { %v107_v15 = vpop.eup %106  ;;  %v40_v16 = vmul.f32 %v105_v14, %v37_v12  ;;  %vm45_vm1 = vweird.f32 %v105_v14 }
  0x20   :  { %v54_v18 = vmul.f32 %v107_v15, %v38_v13  ;;  %vm59_vm3 = vweird.f32 %v107_v15  ;;  %vm46_vm4 = vmor %vm44_vm0, %vm45_vm1 }
  0x21   :  { %v41_v19 = vsub.f32 1.0, %v40_v16  ;;  %vm60_vm6 = vmor %vm58_vm2, %vm59_vm3 }
  0x22   :  { %v55_v22 = vsub.f32 1.0, %v54_v18 }
  0x23   :  { %v42_v24 = vmul.f32 %v105_v14, %v41_v19 }
  0x24   :  { %v56_v26 = vmul.f32 %v107_v15, %v55_v22 }
  0x25   :  { %v43_v27 = vadd.f32 %v105_v14, %v42_v24 }
  0x26   :  { %v57_v29 = vadd.f32 %v107_v15, %v56_v26 }
  0x27   :  { %v47_v30 = vsel %vm46_vm4, %v105_v14, %v43_v27 }
  0x28   :  { %v52_v31 = vsel %vm49_vm5, %v51_v25, %v47_v30  ;;  %v61_v32 = vsel %vm60_vm6, %v107_v15, %v57_v29 }
  0x29   :  { %v67_v33 = vmul.f32 %v52_v31, %v35_v10  ;;  %v66_v34 = vsel %vm63_vm7, %v65_v28, %v61_v32 }
  0x2a   :  { %v68_v35 = vmul.f32 %v66_v34, %v36_v11 }
  0x2b   :  { %v71_v36 = vmul.f32 %v67_v33, %v25_v0 }
  0x2c   :  { %v72_v37 = vmul.f32 %v68_v35, %v26_v1 }
  0x2d   :  { %v73_v38 = vsel %vm69_vm8, %v25_v0, %v71_v36 }
  0x2e   :  { %75 = vst [vmem:[#allocation5] sm:$0xff] %v73_v38  ;;  %v74_v39 = vsel %vm70_vm9, %v26_v1, %v72_v37 }
  0x2f   :  { %76 = vst [vmem:[#allocation5 + $0x8] sm:$0xff] %v74_v39 }
  0x30   :  { %89 = dma.vmem_to_hbm [thread:$0]  %s82_s13, 256, %s84_s16, [#allocation4], %s161_s11, %s161_s11, %s162_s12  }
  0x31   :  { %158 = dma.done.wait [#allocation4], 256  }
  0x32   :  { %159 = vsyncadd [#allocation4], 4294967040 }
  0x33   :  { %94 = vsyncpa [#allocation3], 1 }
  0x34   :  { %95 = vsyncpa [#allocation4], 1 }

</bundles_post_ra>
